<compile_context>
chip_gen: v7x
topology: tpu7x:2x2x1
jax: 0.10.0
libtpu: 0.0.40
codegen_flags: <defaults>
</compile_context>

<pallas_src>
import jax
import jax.numpy as jnp
from jax import lax
from jax.experimental import pallas as pl
from jax.experimental.pallas import tpu as pltpu


C = 1.0                       # curvature of the Poincare ball
BALL_EPS_F32 = 4e-3           # geoopt BALL_EPS for float32
MIN_NORM = 1e-15


def _expmap0_kernel(u_ref, o_ref):
    sqrt_c = float(C) ** 0.5
    inv_sqrt_c = 1.0 / sqrt_c
    maxnorm = (1.0 - BALL_EPS_F32) / sqrt_c

    u = u_ref[...]
    if u.dtype != jnp.float32:
        u = u.astype(jnp.float32)

    # ||u|| over the lane (feature) axis, clamped at geoopt's 1e-15 floor.
    # sqrt + exact reciprocal fused into one EUP rsqrt (overlaps the tanh).
    sumsq = jnp.sum(u * u, axis=-1, keepdims=True)
    sumsq = jnp.maximum(sumsq, jnp.float32(MIN_NORM * MIN_NORM))
    inv_norm = lax.rsqrt(sumsq)                      # ~ 1 / max(||u||, 1e-15)
    u_norm = sumsq * inv_norm                        # ~ max(||u||, 1e-15)

    t = jnp.tanh(jnp.float32(sqrt_c) * u_norm)       # EUP tanh

    # expmap0 scale and analytic projection:
    #   mapped     = u * tanh(sqrt_c*||u||) / (sqrt_c*||u||)
    #   ||mapped|| = tanh(sqrt_c*||u||) / sqrt_c      (no second reduction needed)
    #   clipped    = mapped * maxnorm / ||mapped|| = u * maxnorm / ||u||
    inside_scale = t * inv_norm * jnp.float32(inv_sqrt_c)
    clip_scale = jnp.float32(maxnorm) * inv_norm
    mapped_norm = t * jnp.float32(inv_sqrt_c)
    scale = jnp.where(mapped_norm > jnp.float32(maxnorm), clip_scale, inside_scale)

    o_ref[...] = (u * scale).astype(o_ref.dtype)


def _round_up(x: int, m: int) -> int:
    return (x + m - 1) // m * m


def _tpu_config():
    """Per-generation (block bytes, vmem limit, tensorcores-per-chip)."""
    kind = ""
    try:
        kind = jax.devices()[0].device_kind.lower()
    except Exception:
        pass
    if "v7" in kind:
        # 64 MiB VMEM per TC, ~3.2 TB/s HBM, 2 TensorCores sharing the chip.
        return 4 << 20, 48 << 20, 2
    # v5e / v6e: 128 MiB VMEM, single TensorCore. Also the safe default.
    return 8 << 20, 64 << 20, 1


def to_poincare(u: jax.Array) -> jax.Array:
    """Apply PoincareBall(c=1).expmap0 (with projection) row-wise. u: (batch, dim)."""
    B, D = u.shape
    itemsize = int(jnp.dtype(u.dtype).itemsize)
    target_block_bytes, vmem_limit_bytes, num_tc = _tpu_config()

    # Sublane granularity: 8 rows for 32-bit dtypes, 16 for bf16, 32 for int8/fp8.
    gran = max(8, 32 // max(itemsize, 1))

    # Rows per tile so one input block is ~target_block_bytes of real HBM traffic.
    row_bytes = max(D * itemsize, 1)
    tm = max(gran, (target_block_bytes // row_bytes) // gran * gran)
    tm = min(tm, _round_up(B, gran))

    # Multi-TensorCore chips: aim for >=2 pipelined grid steps per core when the
    # data is large enough (keeps the block DMA hidden behind compute/writeback).
    if num_tc > 1:
        target_steps = 2 * num_tc
        if pl.cdiv(B, tm) < target_steps and B > target_steps * gran:
            tm = max(gran, min(tm, _round_up(pl.cdiv(B, target_steps), gran)))

    # Keep double-buffered in+out blocks (+ f32 cast temps for sub-32-bit inputs)
    # comfortably under the scoped VMEM limit.
    def _footprint(rows: int) -> int:
        blk = rows * D
        f = 4 * blk * itemsize                    # in + out, double-buffered
        if itemsize < 4:
            f += 2 * blk * 4                      # f32 cast temporaries
        return f

    while tm > gran and _footprint(tm) > vmem_limit_bytes - (8 << 20):
        tm = max(gran, (tm // 2) // gran * gran)

    # Ragged last block is fine: the reduction is strictly per-row, so garbage rows
    # in the edge block only affect their own (never written back) output rows.
    grid = (pl.cdiv(B, tm),)

    return pl.pallas_call(
        _expmap0_kernel,
        out_shape=jax.ShapeDtypeStruct((B, D), u.dtype),
        grid_spec=pltpu.PrefetchScalarGridSpec(
            num_scalar_prefetch=0,
            grid=grid,
            in_specs=[pl.BlockSpec((tm, D), lambda i: (i, 0))],
            out_specs=pl.BlockSpec((tm, D), lambda i: (i, 0)),
        ),
        compiler_params=pltpu.CompilerParams(
            dimension_semantics=("parallel",),
            vmem_limit_bytes=vmem_limit_bytes),
        cost_estimate=pl.CostEstimate(
            flops=3 * B * D + 8 * B,
            transcendentals=2 * B,
            bytes_accessed=2 * B * D * itemsize),
    )(u)


def _reference(u: jax.Array) -> jax.Array:
    sqrt_c = jnp.sqrt(jnp.float32(C))
    u = u.astype(jnp.float32)
    n = jnp.maximum(jnp.linalg.norm(u, axis=-1, keepdims=True), MIN_NORM)
    mapped = jnp.tanh(sqrt_c * n) * u / (sqrt_c * n)
    maxnorm = (1.0 - BALL_EPS_F32) / sqrt_c
    mn = jnp.maximum(jnp.linalg.norm(mapped, axis=-1, keepdims=True), MIN_NORM)
    return jnp.where(mn > maxnorm, mapped / mn * maxnorm, mapped)


if __name__ == "__main__":
    key = jax.random.PRNGKey(0)

    # Unused-in-forward buffer from the module's __init__ (kept for fidelity).
    _x_buffer = jnp.zeros((32,), dtype=jnp.float32)

    # Two cases: lane-ragged feature dim (32 < 128) and a batch that does not
    # divide the tile (exercises the ragged last grid block).
    for batch, dim in [(16, 32), (13, 96)]:
        key, sub = jax.random.split(key)
        # Scale rows so both the inside-the-ball and clipped branches are exercised.
        scales = jnp.linspace(0.01, 1.5, batch, dtype=jnp.float32)[:, None]
        u = jax.random.normal(sub, (batch, dim), dtype=jnp.float32) * scales

        out = jax.block_until_ready(to_poincare(u))
        ref = _reference(u)

        assert out.shape == u.shape and out.dtype == u.dtype
        err = float(jnp.max(jnp.abs(out - ref)))
        assert jnp.allclose(out, ref, atol=1e-5, rtol=1e-5), err

    print("KERNEL_OK")
</pallas_src>

<mosaic_0001>
module attributes {stable_mosaic.version = 11 : i64} {
  func.func @_expmap0_kernel(%arg0: i32, %arg1: memref<16x32xf32, #tpu.memory_space<vmem>>, %arg2: memref<16x32xf32, #tpu.memory_space<vmem>>) attributes {dimension_semantics = [#tpu.dimension_semantics<parallel>], iteration_bounds = array<i64: 1>, scalar_prefetch = 0 : i64, scratch_operands = 0 : i64, tpu.core_type = #tpu.core_type<tc>, window_params = [{transform_indices = @transform_0, window_bounds = array<i64: 16, 32>}, {transform_indices = @transform_1, window_bounds = array<i64: 16, 32>}]} {
    %c0 = arith.constant 0 : index
    %c0_0 = arith.constant 0 : index
    %0 = vector.load %arg1[%c0, %c0_0] : memref<16x32xf32, #tpu.memory_space<vmem>>, vector<16x32xf32>
    %1 = arith.mulf %0, %0 : vector<16x32xf32>
    %cst = arith.constant dense<0.000000e+00> : vector<16xf32>
    %2 = vector.multi_reduction <add>, %1, %cst [1] : vector<16x32xf32> to vector<16xf32>
    %3 = vector.shape_cast %2 : vector<16xf32> to vector<16x1xf32>
    %cst_1 = arith.constant 1.000000e-30 : f32
    %4 = vector.broadcast %cst_1 : f32 to vector<16x1xf32>
    %5 = arith.maximumf %3, %4 : vector<16x1xf32>
    %6 = math.rsqrt %5 : vector<16x1xf32>
    %7 = arith.mulf %5, %6 : vector<16x1xf32>
    %cst_2 = arith.constant 1.000000e+00 : f32
    %8 = vector.broadcast %cst_2 : f32 to vector<16x1xf32>
    %9 = arith.mulf %8, %7 : vector<16x1xf32>
    %10 = math.tanh %9 : vector<16x1xf32>
    %11 = arith.mulf %10, %6 : vector<16x1xf32>
    %cst_3 = arith.constant 1.000000e+00 : f32
    %12 = vector.broadcast %cst_3 : f32 to vector<16x1xf32>
    %13 = arith.mulf %11, %12 : vector<16x1xf32>
    %cst_4 = arith.constant 0.995999991 : f32
    %14 = vector.broadcast %cst_4 : f32 to vector<16x1xf32>
    %15 = arith.mulf %14, %6 : vector<16x1xf32>
    %cst_5 = arith.constant 1.000000e+00 : f32
    %16 = vector.broadcast %cst_5 : f32 to vector<16x1xf32>
    %17 = arith.mulf %10, %16 : vector<16x1xf32>
    %cst_6 = arith.constant 0.995999991 : f32
    %18 = vector.broadcast %cst_6 : f32 to vector<16x1xf32>
    %19 = arith.cmpf ogt, %17, %18 : vector<16x1xf32>
    %20 = arith.select %19, %15, %13 : vector<16x1xi1>, vector<16x1xf32>
    %21 = vector.broadcast %20 : vector<16x1xf32> to vector<16x32xf32>
    %22 = arith.mulf %0, %21 : vector<16x32xf32>
    %c0_7 = arith.constant 0 : index
    %c0_8 = arith.constant 0 : index
    %23 = vector.load %arg2[%c0_7, %c0_8] : memref<16x32xf32, #tpu.memory_space<vmem>>, vector<16x32xf32>
    tpu.vector_store %arg2[%c0_7, %c0_8], %22 {strides = array<i32>} : memref<16x32xf32, #tpu.memory_space<vmem>>, vector<16x32xf32>,
    return
  }
  func.func @transform_0(%arg0: i32) -> (i32, i32) {
    %c0_i32 = arith.constant 0 : i32
    %c0_i32_0 = arith.constant 0 : i32
    return %arg0, %c0_i32 : i32, i32
  }
  func.func @transform_1(%arg0: i32) -> (i32, i32) {
    %c0_i32 = arith.constant 0 : i32
    %c0_i32_0 = arith.constant 0 : i32
    return %arg0, %c0_i32 : i32, i32
  }
}

</mosaic_0001>

<bundles_post_ra>
// kernel: tpu_custom_call.1
= control target key start
LH: loop header
LB: loop body
LE: loop exit
PB: predicated region body
PF: predicated region fallthrough
CT: control target
= control target key end

     0   :  { %6 = vsyncpa [#allocation3], 0  ;;  %s179_s0 = inlined_call_operand.hbm [shape: f32[16,32], index: 0, kind: input, shape index: {}]   ;;  %s180_s1 = inlined_call_operand.hbm [shape: f32[16,32], index: 1, kind: output, shape index: {}]  }
   0x1   :  { %7 = vsyncpa [#allocation4], 0  ;;  %s131_s6 = smov [#allocation2]   ;;  %s83_s10 = scalar_lea.hbm %s179_s0, 256 }
   0x2   :  { %s13_s7 = sshll.u32 %s131_s6, 4  ;;  %p84_p0 = scmp.ne.s32.totalorder %s179_s0, %s83_s10  ;;  %s14_s7 = int_to_ptr.vmem [resolvable:$true] %s13_s7 }
   0x3   :  { %p87_p1 = scmp.lt.u32.totalorder %s83_s10, %s179_s0 }
   0x5   :  { %p89_p2 = pnand %p87_p1, %p84_p0 }
   0x7   :  { %92 = shalt.err (!%p89_p2)
}
   0x8   :  { %s93_s15 = scalar_lea.vmem %s14_s7, 256  ;;  %p98_p4 = scmp.lt.s32.totalorder %s14_s7, %s14_s7 }
   0x9   :  { %p94_p3 = scmp.ne.s32.totalorder %s14_s7, %s93_s15  ;;  %p99_p5 = scmp.lt.s32.totalorder %s93_s15, %s93_s15 }
   0xb   :  { %p100_p6 = por %p99_p5, %p98_p4 }
   0xd   :  { %p101_p7 = pnand %p100_p6, %p94_p3 }
   0xf   :  { %104 = shalt.err (!%p101_p7)
}
  0x10   :  { %s132_s16 = smov 128   ;;  %s133_s17 = smov 8  }
  0x11   :  { %19 = dma.hbm_to_vmem [thread:$0]  %s179_s0, 256, %s14_s7, [#allocation3], %s132_s16, %s132_s16, %s133_s17  }
  0x12   :  { %127 = dma.done.wait [#allocation3], 256  }
  0x13   :  { %128 = vsyncadd [#allocation3], 4294967040  ;;  %v23_v0 = vld [vmem:[#allocation2] sm:$0xff]  ;;  %vm27_vm0 = vcmask 261120   ;;  %v24_v1 = vld [vmem:[#allocation2 + $0x8] sm:$0xff]  ;;  %s134_s0 = smov [#allocation5]  }
  0x14   :  { %v25_v2 = vmul.f32 %v23_v0, %v23_v0  ;;  %v26_v3 = vmul.f32 %v24_v1, %v24_v1  ;;  %s59_s20 = sshll.u32 %s134_s0, 4  ;;  %s60_s20 = int_to_ptr.vmem [resolvable:$true] %s59_s20 }
  0x15   :  { %s105_s21 = scalar_lea.vmem %s60_s20, 256  ;;  %p110_p9 = scmp.lt.s32.totalorder %s60_s20, %s60_s20 }
  0x16   :  { %v28_v4 = vsel %vm27_vm0, %v25_v2, 0.0  ;;  %v31_v5 = vsel %vm27_vm0, %v26_v3, 0.0  ;;  %p106_p8 = scmp.ne.s32.totalorder %s60_s20, %s105_s21  ;;  %p111_p10 = scmp.lt.s32.totalorder %s105_s21, %s105_s21 }
  0x17   :  { %29 = vadd.xlane.f32.xlu0 %v28_v4 }
  0x18   :  { %p112_p11 = por %p111_p10, %p110_p9 }
  0x1a   :  { %p113_p12 = pnand %p112_p11, %p106_p8 }
  0x1b   :  { %32 = vadd.xlane.f32.xlu0 %v31_v5 }
  0xa4   :  { %v30_v6 = vpop.xlane.xlu0 %29 }
  0xa5   :  { %v34_v7 = vmax.f32 %v30_v6, 1e-30 }
  0xa7   :  { %75 = vrsqrt.f32 %v34_v7 }
  0xa8   :  { %v33_v8 = vpop.xlane.xlu0 %32 }
  0xa9   :  { %v35_v9 = vmax.f32 %v33_v8, 1e-30 }
  0xab   :  { %77 = vrsqrt.f32 %v35_v9 }
  0xb1   :  { %v76_v10 = vpop.eup %75 }
  0xb2   :  { %v38_v11 = vmul.f32 %v76_v10, %v34_v7  ;;  %v44_v16 = vmul.f32 0.996, %v76_v10 }
  0xb4   :  { %79 = vtanh.f32 %v38_v11 }
  0xb5   :  { %v78_v12 = vpop.eup %77 }
  0xb6   :  { %v39_v13 = vmul.f32 %v78_v12, %v35_v9  ;;  %v45_v21 = vmul.f32 0.996, %v78_v12 }
  0xb8   :  { %81 = vtanh.f32 %v39_v13 }
  0xbe   :  { %v80_v14 = vpop.eup %79 }
  0xbf   :  { %v42_v15 = vmul.f32 %v80_v14, %v76_v10  ;;  %vm46_vm1 = vcmp.gt.f32.partialorder %v80_v14, 0.996 }
  0xc1   :  { %v48_v17 = vsel %vm46_vm1, %v44_v16, %v42_v15 }
  0xc2   :  { %v82_v18 = vpop.eup %81  ;;  %v50_v19 = vmul.f32 %v48_v17, %v23_v0 }
  0xc3   :  { %v43_v20 = vmul.f32 %v82_v18, %v78_v12  ;;  %vm47_vm2 = vcmp.gt.f32.partialorder %v82_v18, 0.996 }
  0xc4   :  { %52 = vst.msk [vmem:[#allocation5] sm:$0xff] %vm27_vm0, %v50_v19 }
  0xc5   :  { %v49_v22 = vsel %vm47_vm2, %v45_v21, %v43_v20 }
  0xc6   :  { %v51_v23 = vmul.f32 %v49_v22, %v24_v1 }
  0xc8   :  { %53 = vst.msk [vmem:[#allocation5 + $0x8] sm:$0xff] %vm27_vm0, %v51_v23 }
  0xc9   :  { %116 = shalt.err (!%p113_p12)
}
  0xca   :  { %s117_s24 = scalar_lea.hbm %s180_s1, 256 }
  0xcb   :  { %p118_p13 = scmp.ne.s32.totalorder %s180_s1, %s117_s24  ;;  %p121_p0 = scmp.lt.u32.totalorder %s117_s24, %s180_s1 }
  0xcd   :  { %p123_p1 = pnand %p121_p0, %p118_p13 }
  0xcf   :  { %126 = shalt.err (!%p123_p1)
}
  0xd0   :  { %65 = dma.vmem_to_hbm [thread:$0]  %s60_s20, 256, %s180_s1, [#allocation4], %s132_s16, %s132_s16, %s133_s17  }
  0xd1   :  { %129 = dma.done.wait [#allocation4], 256  }
  0xd2   :  { %130 = vsyncadd [#allocation4], 4294967040 }
  0xd3   :  { %69 = vsyncpa [#allocation3], 1 }
  0xd4   :  { %70 = vsyncpa [#allocation4], 1 }

</bundles_post_ra>
